<compile_context>
chip_gen: v6e
topology: v6e:2x2x1
jax: 0.10.0
libtpu: 0.0.40
codegen_flags: <defaults>
</compile_context>

<pallas_src>
import functools

import jax
import jax.numpy as jnp
from jax import lax
from jax.experimental import pallas as pl
from jax.experimental.pallas import tpu as pltpu


def _deepnp_kernel(x_ref, w_ih_ref, w_hh_ref, b_ref, fc_w_ref, fc_b_ref,
                   out_ref, seq_ref, gin_ref, *,
                   hidden, seq_len, future, threshold, prefix_unroll):
    """All `future` EstBlocks for one batch slab.

    Layouts (per batch block of size Bb):
      x_ref    : (T, Bb, 1)        time-major shared input
      w_ih_ref : (F, 1, 4H)        input->gate weights (input_size == 1)
      w_hh_ref : (F, H, 4H)        recurrent weights, pre-transposed (bf16/f32)
      b_ref    : (F, 1, 4H)        b_ih + b_hh combined
      fc_w_ref : (F, H, 1), fc_b_ref : (F, 1, 1)
      out_ref  : (F, Bb, 1)        per-block predictions
      seq_ref  : (T+F, Bb, 1)      running mem_vec  [x ; p_0 ; p_1 ; ...]
      gin_ref  : (T+F, Bb, 4H)     precomputed input projection per position
    """
    H = hidden
    T = seq_len
    Bb = x_ref.shape[1]

    # Stage the shared input prefix once.  (No zero-fill of the tail / output:
    # every slot is written before it is read.)
    seq_ref[0:T, :, :] = x_ref[...]

    h0 = jnp.zeros((Bb, H), jnp.float32)
    c0 = jnp.zeros((Bb, H), jnp.float32)

    def run_block(blk, carry):
        del carry
        w_ih = w_ih_ref[blk]      # (1, 4H)
        w_hh = w_hh_ref[blk]      # (H, 4H)   (bf16 by default)
        bias = b_ref[blk]         # (1, 4H)
        fc_w = fc_w_ref[blk]      # (H, 1)
        fc_b = fc_b_ref[blk]      # (1, 1)

        # Vectorized input projection for every position of the current
        # sequence (x ++ previous predictions).  Positions >= T + blk hold
        # garbage but are never read by the recurrence below.
        gin_ref[...] = seq_ref[...] * w_ih[None, :, :] + bias[None, :, :]

        def step(t, hc):
            h, c = hc
            gates = gin_ref[t] + jnp.dot(h.astype(w_hh.dtype), w_hh,
                                         preferred_element_type=jnp.float32)
            # PyTorch LSTM gate order: i, f, g, o  (static lane slices).
            i_g = jax.nn.sigmoid(gates[:, 0 * H:1 * H])
            f_g = jax.nn.sigmoid(gates[:, 1 * H:2 * H])
            g_g = jnp.tanh(gates[:, 2 * H:3 * H])
            o_g = jax.nn.sigmoid(gates[:, 3 * H:4 * H])
            c_new = f_g * c + i_g * g_g
            h_new = o_g * jnp.tanh(c_new)
            return h_new, c_new

        # Static-length prefix over x (unrolled for cross-step scheduling),
        # then the dynamic tail over the blk previously appended predictions.
        try:
            h, c = lax.fori_loop(0, T, step, (h0, c0), unroll=prefix_unroll)
        except TypeError:   # older jax without fori_loop(unroll=...)
            h, c = lax.fori_loop(0, T, step, (h0, c0))
        h, _ = lax.fori_loop(T, T + blk, step, (h, c))

        s = jnp.dot(h, fc_w, preferred_element_type=jnp.float32) + fc_b   # (Bb, 1)
        p = jax.nn.sigmoid(s - threshold)                                 # (Bb, 1)

        # Append prediction to the running memory (mem_vec) and emit it.
        seq_ref[pl.ds(T + blk, 1), :, :] = p[None, :, :]
        out_ref[pl.ds(blk, 1), :, :] = p[None, :, :]
        return 0

    lax.fori_loop(0, future, run_block, 0)


def _default_batch_blocks(batch):
    """Split the batch across TensorCores only where it helps (v7x: 2 TCs)."""
    if batch % 2 != 0:
        return 1
    try:
        kind = jax.devices()[0].device_kind.lower()
    except Exception:
        return 1
    return 2 if ("v7" in kind or "tpu7" in kind) else 1


def deepnp_forward(x, params, threshold, *, mxu_dtype=jnp.bfloat16,
                   batch_blocks=None, prefix_unroll=None):
    """x: (B, T, 1) f32.  params in PyTorch-stacked layout.  Returns (B, future)."""
    w_ih, w_hh, b, fc_w, fc_b = params
    future = w_ih.shape[0]
    H = w_hh.shape[2]
    B, T, in_sz = x.shape
    assert in_sz == 1, "DeepNp concatenation requires input_size == 1"
    # TODO(synk): sliding-window mem_vec (future > max_mem=500) not implemented.
    assert future <= 500

    nb = batch_blocks if batch_blocks is not None else _default_batch_blocks(B)
    if B % nb != 0:
        nb = 1
    Bb = B // nb
    L = T + future
    if prefix_unroll is None:
        prefix_unroll = True if T <= 64 else 8

    # Input rearranged to (nb, T, Bb, 1): time-major per batch block.
    x_tm = jnp.transpose(x[..., 0].astype(jnp.float32).reshape(nb, Bb, T),
                         (0, 2, 1))[..., None]

    # Repack parameters into lane-dense layouts (hidden / 4*hidden on lanes).
    w_ih_row = jnp.transpose(w_ih, (0, 2, 1)).astype(jnp.float32)    # (F, 1, 4H)
    b_row = jnp.transpose(b, (0, 2, 1)).astype(jnp.float32)          # (F, 1, 4H)
    w_hh_t = jnp.transpose(w_hh, (0, 2, 1)).astype(mxu_dtype)        # (F, H, 4H)
    fc_w_col = jnp.transpose(fc_w, (0, 2, 1)).astype(jnp.float32)    # (F, H, 1)
    fc_bias = fc_b.astype(jnp.float32)                               # (F, 1, 1)

    kernel = functools.partial(
        _deepnp_kernel, hidden=H, seq_len=T, future=future,
        threshold=float(threshold), prefix_unroll=prefix_unroll)

    grid_spec = pltpu.PrefetchScalarGridSpec(
        num_scalar_prefetch=0,
        grid=(nb,),
        in_specs=[
            pl.BlockSpec((None, T, Bb, 1), lambda i: (i, 0, 0, 0)),   # x slab
            pl.BlockSpec((future, 1, 4 * H), lambda i: (0, 0, 0)),    # W_ih (all blocks)
            pl.BlockSpec((future, H, 4 * H), lambda i: (0, 0, 0)),    # W_hh^T (all blocks)
            pl.BlockSpec((future, 1, 4 * H), lambda i: (0, 0, 0)),    # bias (all blocks)
            pl.BlockSpec((future, H, 1), lambda i: (0, 0, 0)),        # fc weight
            pl.BlockSpec((future, 1, 1), lambda i: (0, 0, 0)),        # fc bias
        ],
        out_specs=pl.BlockSpec((None, future, Bb, 1), lambda i: (i, 0, 0, 0)),
        scratch_shapes=[
            pltpu.VMEM((L, Bb, 1), jnp.float32),        # seq = [x ; predictions]
            pltpu.VMEM((L, Bb, 4 * H), jnp.float32),    # precomputed input projection
        ],
    )

    # Rough VMEM estimate; raise the scoped limit only for big configs.
    weight_bytes = sum(int(a.size) * a.dtype.itemsize
                       for a in (w_ih_row, w_hh_t, b_row, fc_w_col, fc_bias))
    scratch_bytes = 2 * L * 8 * 128 * 4          # padded (8,128) tiles, both scratches
    vmem_est = 2 * weight_bytes + scratch_bytes + (4 << 20)
    cparams = dict(dimension_semantics=("parallel",))
    if vmem_est > (24 << 20):
        cparams["vmem_limit_bytes"] = int(min(vmem_est + (8 << 20), 100 << 20))

    out = pl.pallas_call(
        kernel,
        out_shape=jax.ShapeDtypeStruct((nb, future, Bb, 1), jnp.float32),
        grid_spec=grid_spec,
        compiler_params=pltpu.CompilerParams(**cparams),
    )(x_tm, w_ih_row, w_hh_t, b_row, fc_w_col, fc_bias)

    # (nb, future, Bb, 1) -> (B, future) in original batch order.
    return jnp.transpose(out[..., 0], (0, 2, 1)).reshape(B, future)


def deepnp_reference(x, params, threshold):
    """Pure-JAX reference mirroring the PyTorch semantics (f32 everywhere)."""
    w_ih, w_hh, b, fc_w, fc_b = params
    future = w_ih.shape[0]
    H = w_hh.shape[2]
    B = x.shape[0]

    def run_block(k, seq):  # seq: (B, L, 1)
        wih = w_ih[k]               # (4H, 1)
        whh = w_hh[k]               # (4H, H)
        bb = b[k][:, 0]             # (4H,)

        def step(carry, x_t):       # x_t: (B, 1)
            h, c = carry
            gates = x_t @ wih.T + h @ whh.T + bb
            i_g = jax.nn.sigmoid(gates[:, :H])
            f_g = jax.nn.sigmoid(gates[:, H:2 * H])
            g_g = jnp.tanh(gates[:, 2 * H:3 * H])
            o_g = jax.nn.sigmoid(gates[:, 3 * H:])
            c_new = f_g * c + i_g * g_g
            h_new = o_g * jnp.tanh(c_new)
            return (h_new, c_new), None

        h0 = jnp.zeros((B, H), jnp.float32)
        c0 = jnp.zeros((B, H), jnp.float32)
        (h, _), _ = lax.scan(step, (h0, c0), jnp.transpose(seq, (1, 0, 2)))
        s = h @ fc_w[k][0] + fc_b[k, 0, 0]          # (B,)
        return jax.nn.sigmoid(s - threshold)

    preds = []
    for k in range(future):
        if preds:
            mem = jnp.stack(preds, axis=1)[:, :, None]       # (B, k, 1)
            seq = jnp.concatenate([x, mem], axis=1)
        else:
            seq = x
        preds.append(run_block(k, seq))
    return jnp.stack(preds, axis=1)                           # (B, future)


if __name__ == "__main__":
    B, T, H, FUTURE = 2, 8, 32, 4
    THRESHOLD = 0.5

    key = jax.random.PRNGKey(0)
    kx, k1, k2, k3, k4, k5 = jax.random.split(key, 6)

    x = jax.random.normal(kx, (B, T, 1), dtype=jnp.float32)

    # Deterministic synthetic parameters (per-block LSTM + FC), stacked over `future`.
    w_ih = 0.2 * jax.random.normal(k1, (FUTURE, 4 * H, 1), dtype=jnp.float32)
    w_hh = 0.2 * jax.random.normal(k2, (FUTURE, 4 * H, H), dtype=jnp.float32)
    bias = 0.1 * jax.random.normal(k3, (FUTURE, 4 * H, 1), dtype=jnp.float32)  # b_ih+b_hh
    fc_w = 0.2 * jax.random.normal(k4, (FUTURE, 1, H), dtype=jnp.float32)
    fc_b = 0.1 * jax.random.normal(k5, (FUTURE, 1, 1), dtype=jnp.float32)
    params = (w_ih, w_hh, bias, fc_w, fc_b)

    ref = jax.block_until_ready(deepnp_reference(x, params, THRESHOLD))

    # Full-precision kernel path: tight check of the kernel logic.
    out_f32 = jax.block_until_ready(
        deepnp_forward(x, params, THRESHOLD, mxu_dtype=jnp.float32))
    assert out_f32.shape == (B, FUTURE)
    assert jnp.allclose(out_f32, ref, atol=5e-3, rtol=5e-3), (out_f32, ref)

    # Default (bf16 recurrent matmul, f32 accumulate): looser tolerance for
    # bf16 rounding of the MXU inputs.
    out = jax.block_until_ready(deepnp_forward(x, params, THRESHOLD))
    assert out.shape == (B, FUTURE)
    assert jnp.allclose(out, ref, atol=2e-2, rtol=2e-2), (out, ref)

    print("KERNEL_OK")
</pallas_src>

<mosaic_0001>
module attributes {stable_mosaic.version = 11 : i64} {
  func.func @_deepnp_kernel(%arg0: i32, %arg1: memref<1x8x2x1xf32, #tpu.memory_space<vmem>>, %arg2: memref<4x1x128xf32, #tpu.memory_space<vmem>>, %arg3: memref<4x32x128xf32, #tpu.memory_space<vmem>>, %arg4: memref<4x1x128xf32, #tpu.memory_space<vmem>>, %arg5: memref<4x32x1xf32, #tpu.memory_space<vmem>>, %arg6: memref<4x1x1xf32, #tpu.memory_space<vmem>>, %arg7: memref<1x4x2x1xf32, #tpu.memory_space<vmem>>, %arg8: memref<12x2x1xf32, #tpu.memory_space<vmem>>, %arg9: memref<12x2x128xf32, #tpu.memory_space<vmem>>) attributes {dimension_semantics = [#tpu.dimension_semantics<parallel>], iteration_bounds = array<i64: 1>, scalar_prefetch = 0 : i64, scratch_operands = 2 : i64, tpu.core_type = #tpu.core_type<tc>, window_params = [{transform_indices = @transform_0, window_bounds = array<i64: 1, 8, 2, 1>}, {pipeline_mode = #tpu.pipeline_mode<synchronous>, transform_indices = @transform_1, window_bounds = array<i64: 4, 1, 128>}, {pipeline_mode = #tpu.pipeline_mode<synchronous>, transform_indices = @transform_2, window_bounds = array<i64: 4, 32, 128>}, {pipeline_mode = #tpu.pipeline_mode<synchronous>, transform_indices = @transform_3, window_bounds = array<i64: 4, 1, 128>}, {pipeline_mode = #tpu.pipeline_mode<synchronous>, transform_indices = @transform_4, window_bounds = array<i64: 4, 32, 1>}, {pipeline_mode = #tpu.pipeline_mode<synchronous>, transform_indices = @transform_5, window_bounds = array<i64: 4, 1, 1>}, {transform_indices = @transform_6, window_bounds = array<i64: 1, 4, 2, 1>}]} {
    %c0 = arith.constant 0 : index
    %c0_0 = arith.constant 0 : index
    %c0_1 = arith.constant 0 : index
    %c0_2 = arith.constant 0 : index
    %0 = vector.load %arg1[%c0, %c0_0, %c0_1, %c0_2] : memref<1x8x2x1xf32, #tpu.memory_space<vmem>>, vector<1x8x2x1xf32>
    %1 = vector.shape_cast %0 : vector<1x8x2x1xf32> to vector<8x2x1xf32>
    %c0_3 = arith.constant 0 : index
    %c0_4 = arith.constant 0 : index
    %c0_5 = arith.constant 0 : index
    %2 = vector.load %arg8[%c0_3, %c0_4, %c0_5] : memref<12x2x1xf32, #tpu.memory_space<vmem>>, vector<8x2x1xf32>
    tpu.vector_store %arg8[%c0_3, %c0_4, %c0_5], %1 {strides = array<i32>} : memref<12x2x1xf32, #tpu.memory_space<vmem>>, vector<8x2x1xf32>,
    %cst = arith.constant 0.000000e+00 : f32
    %3 = vector.broadcast %cst : f32 to vector<2x32xf32>
    %cst_6 = arith.constant 0.000000e+00 : f32
    %4 = vector.broadcast %cst_6 : f32 to vector<2x32xf32>
    %c0_i32 = arith.constant 0 : i32
    %c4_i32 = arith.constant 4 : i32
    %5 = arith.addi %c0_i32, %c4_i32 : i32
    %c1_i32 = arith.constant 1 : i32
    scf.for %arg10 = %c0_i32 to %5 step %c1_i32  : i32 {
      %6 = arith.index_cast %arg10 : i32 to index
      %c0_8 = arith.constant 0 : index
      %c0_9 = arith.constant 0 : index
      %7 = vector.load %arg2[%6, %c0_8, %c0_9] : memref<4x1x128xf32, #tpu.memory_space<vmem>>, vector<1x1x128xf32>
      %8 = vector.shape_cast %7 : vector<1x1x128xf32> to vector<1x128xf32>
      %9 = arith.index_cast %arg10 : i32 to index
      %c0_10 = arith.constant 0 : index
      %c0_11 = arith.constant 0 : index
      %10 = vector.load %arg3[%9, %c0_10, %c0_11] : memref<4x32x128xf32, #tpu.memory_space<vmem>>, vector<1x32x128xf32>
      %11 = vector.shape_cast %10 : vector<1x32x128xf32> to vector<32x128xf32>
      %12 = arith.index_cast %arg10 : i32 to index
      %c0_12 = arith.constant 0 : index
      %c0_13 = arith.constant 0 : index
      %13 = vector.load %arg4[%12, %c0_12, %c0_13] : memref<4x1x128xf32, #tpu.memory_space<vmem>>, vector<1x1x128xf32>
      %14 = vector.shape_cast %13 : vector<1x1x128xf32> to vector<1x128xf32>
      %15 = arith.index_cast %arg10 : i32 to index
      %c0_14 = arith.constant 0 : index
      %c0_15 = arith.constant 0 : index
      %16 = vector.load %arg5[%15, %c0_14, %c0_15] : memref<4x32x1xf32, #tpu.memory_space<vmem>>, vector<1x32x1xf32>
      %17 = vector.shape_cast %16 : vector<1x32x1xf32> to vector<32x1xf32>
      %18 = arith.index_cast %arg10 : i32 to index
      %c0_16 = arith.constant 0 : index
      %c0_17 = arith.constant 0 : index
      %19 = vector.load %arg6[%18, %c0_16, %c0_17] : memref<4x1x1xf32, #tpu.memory_space<vmem>>, vector<1x1x1xf32>
      %20 = vector.shape_cast %19 : vector<1x1x1xf32> to vector<1x1xf32>
      %c0_18 = arith.constant 0 : index
      %c0_19 = arith.constant 0 : index
      %c0_20 = arith.constant 0 : index
      %21 = vector.load %arg8[%c0_18, %c0_19, %c0_20] : memref<12x2x1xf32, #tpu.memory_space<vmem>>, vector<12x2x1xf32>
      %22 = vector.shape_cast %8 : vector<1x128xf32> to vector<1x1x128xf32>
      %23 = vector.broadcast %21 : vector<12x2x1xf32> to vector<12x2x128xf32>
      %24 = vector.broadcast %22 : vector<1x1x128xf32> to vector<12x2x128xf32>
      %25 = arith.mulf %23, %24 : vector<12x2x128xf32>
      %26 = vector.shape_cast %14 : vector<1x128xf32> to vector<1x1x128xf32>
      %27 = vector.broadcast %26 : vector<1x1x128xf32> to vector<12x2x128xf32>
      %28 = arith.addf %25, %27 : vector<12x2x128xf32>
      %c0_21 = arith.constant 0 : index
      %c0_22 = arith.constant 0 : index
      %c0_23 = arith.constant 0 : index
      %29 = vector.load %arg9[%c0_21, %c0_22, %c0_23] : memref<12x2x128xf32, #tpu.memory_space<vmem>>, vector<12x2x128xf32>
      tpu.vector_store %arg9[%c0_21, %c0_22, %c0_23], %28 {strides = array<i32>} : memref<12x2x128xf32, #tpu.memory_space<vmem>>, vector<12x2x128xf32>,
      %c0_i32_24 = arith.constant 0 : i32
      %30 = arith.index_cast %c0_i32_24 : i32 to index
      %c0_25 = arith.constant 0 : index
      %c0_26 = arith.constant 0 : index
      %31 = vector.load %arg9[%30, %c0_25, %c0_26] : memref<12x2x128xf32, #tpu.memory_space<vmem>>, vector<1x2x128xf32>
      %32 = vector.shape_cast %31 : vector<1x2x128xf32> to vector<2x128xf32>
      %cst_27 = arith.constant dense<0.000000e+00> : vector<2x128xf32>
      %33 = tpu.matmul %3, %11, %cst_27 {dimension_numbers = #tpu.dot_dimension_numbers<[1], [0], [0], [1], [0, 0, 1, 1], [], []>} : vector<2x32xf32>, vector<32x128xf32>, vector<2x128xf32> -> vector<2x128xf32>
      %34 = arith.addf %32, %33 : vector<2x128xf32>
      %35 = vector.extract_strided_slice %34 {offsets = [0, 0], sizes = [2, 32], strides = [1, 1]} : vector<2x128xf32> to vector<2x32xf32>
      %36 = arith.negf %35 : vector<2x32xf32>
      %37 = math.exp %36 : vector<2x32xf32>
      %cst_28 = arith.constant 1.000000e+00 : f32
      %38 = vector.broadcast %cst_28 : f32 to vector<2x32xf32>
      %39 = arith.addf %38, %37 : vector<2x32xf32>
      %40 = arith.divf %38, %39 : vector<2x32xf32>
      %41 = vector.extract_strided_slice %34 {offsets = [0, 32], sizes = [2, 32], strides = [1, 1]} : vector<2x128xf32> to vector<2x32xf32>
      %42 = arith.negf %41 : vector<2x32xf32>
      %43 = math.exp %42 : vector<2x32xf32>
      %cst_29 = arith.constant 1.000000e+00 : f32
      %44 = vector.broadcast %cst_29 : f32 to vector<2x32xf32>
      %45 = arith.addf %44, %43 : vector<2x32xf32>
      %46 = arith.divf %44, %45 : vector<2x32xf32>
      %47 = vector.extract_strided_slice %34 {offsets = [0, 64], sizes = [2, 32], strides = [1, 1]} : vector<2x128xf32> to vector<2x32xf32>
      %48 = math.tanh %47 : vector<2x32xf32>
      %49 = vector.extract_strided_slice %34 {offsets = [0, 96], sizes = [2, 32], strides = [1, 1]} : vector<2x128xf32> to vector<2x32xf32>
      %50 = arith.negf %49 : vector<2x32xf32>
      %51 = math.exp %50 : vector<2x32xf32>
      %cst_30 = arith.constant 1.000000e+00 : f32
      %52 = vector.broadcast %cst_30 : f32 to vector<2x32xf32>
      %53 = arith.addf %52, %51 : vector<2x32xf32>
      %54 = arith.divf %52, %53 : vector<2x32xf32>
      %55 = arith.mulf %46, %4 : vector<2x32xf32>
      %56 = arith.mulf %40, %48 : vector<2x32xf32>
      %57 = arith.addf %55, %56 : vector<2x32xf32>
      %58 = math.tanh %57 : vector<2x32xf32>
      %59 = arith.mulf %54, %58 : vector<2x32xf32>
      %c1_i32_31 = arith.constant 1 : i32
      %60 = arith.index_cast %c1_i32_31 : i32 to index
      %c0_32 = arith.constant 0 : index
      %c0_33 = arith.constant 0 : index
      %61 = vector.load %arg9[%60, %c0_32, %c0_33] : memref<12x2x128xf32, #tpu.memory_space<vmem>>, vector<1x2x128xf32>
      %62 = vector.shape_cast %61 : vector<1x2x128xf32> to vector<2x128xf32>
      %cst_34 = arith.constant dense<0.000000e+00> : vector<2x128xf32>
      %63 = tpu.matmul %59, %11, %cst_34 {dimension_numbers = #tpu.dot_dimension_numbers<[1], [0], [0], [1], [0, 0, 1, 1], [], []>} : vector<2x32xf32>, vector<32x128xf32>, vector<2x128xf32> -> vector<2x128xf32>
      %64 = arith.addf %62, %63 : vector<2x128xf32>
      %65 = vector.extract_strided_slice %64 {offsets = [0, 0], sizes = [2, 32], strides = [1, 1]} : vector<2x128xf32> to vector<2x32xf32>
      %66 = arith.negf %65 : vector<2x32xf32>
      %67 = math.exp %66 : vector<2x32xf32>
      %cst_35 = arith.constant 1.000000e+00 : f32
      %68 = vector.broadcast %cst_35 : f32 to vector<2x32xf32>
      %69 = arith.addf %68, %67 : vector<2x32xf32>
      %70 = arith.divf %68, %69 : vector<2x32xf32>
      %71 = vector.extract_strided_slice %64 {offsets = [0, 32], sizes = [2, 32], strides = [1, 1]} : vector<2x128xf32> to vector<2x32xf32>
      %72 = arith.negf %71 : vector<2x32xf32>
      %73 = math.exp %72 : vector<2x32xf32>
      %cst_36 = arith.constant 1.000000e+00 : f32
      %74 = vector.broadcast %cst_36 : f32 to vector<2x32xf32>
      %75 = arith.addf %74, %73 : vector<2x32xf32>
      %76 = arith.divf %74, %75 : vector<2x32xf32>
      %77 = vector.extract_strided_slice %64 {offsets = [0, 64], sizes = [2, 32], strides = [1, 1]} : vector<2x128xf32> to vector<2x32xf32>
      %78 = math.tanh %77 : vector<2x32xf32>
      %79 = vector.extract_strided_slice %64 {offsets = [0, 96], sizes = [2, 32], strides = [1, 1]} : vector<2x128xf32> to vector<2x32xf32>
      %80 = arith.negf %79 : vector<2x32xf32>
      %81 = math.exp %80 : vector<2x32xf32>
      %cst_37 = arith.constant 1.000000e+00 : f32
      %82 = vector.broadcast %cst_37 : f32 to vector<2x32xf32>
      %83 = arith.addf %82, %81 : vector<2x32xf32>
      %84 = arith.divf %82, %83 : vector<2x32xf32>
      %85 = arith.mulf %76, %57 : vector<2x32xf32>
      %86 = arith.mulf %70, %78 : vector<2x32xf32>
      %87 = arith.addf %85, %86 : vector<2x32xf32>
      %88 = math.tanh %87 : vector<2x32xf32>
      %89 = arith.mulf %84, %88 : vector<2x32xf32>
      %c2_i32 = arith.constant 2 : i32
      %90 = arith.index_cast %c2_i32 : i32 to index
      %c0_38 = arith.constant 0 : index
      %c0_39 = arith.constant 0 : index
      %91 = vector.load %arg9[%90, %c0_38, %c0_39] : memref<12x2x128xf32, #tpu.memory_space<vmem>>, vector<1x2x128xf32>
      %92 = vector.shape_cast %91 : vector<1x2x128xf32> to vector<2x128xf32>
      %cst_40 = arith.constant dense<0.000000e+00> : vector<2x128xf32>
      %93 = tpu.matmul %89, %11, %cst_40 {dimension_numbers = #tpu.dot_dimension_numbers<[1], [0], [0], [1], [0, 0, 1, 1], [], []>} : vector<2x32xf32>, vector<32x128xf32>, vector<2x128xf32> -> vector<2x128xf32>
      %94 = arith.addf %92, %93 : vector<2x128xf32>
      %95 = vector.extract_strided_slice %94 {offsets = [0, 0], sizes = [2, 32], strides = [1, 1]} : vector<2x128xf32> to vector<2x32xf32>
      %96 = arith.negf %95 : vector<2x32xf32>
      %97 = math.exp %96 : vector<2x32xf32>
      %cst_41 = arith.constant 1.000000e+00 : f32
      %98 = vector.broadcast %cst_41 : f32 to vector<2x32xf32>
      %99 = arith.addf %98, %97 : vector<2x32xf32>
      %100 = arith.divf %98, %99 : vector<2x32xf32>
      %101 = vector.extract_strided_slice %94 {offsets = [0, 32], sizes = [2, 32], strides = [1, 1]} : vector<2x128xf32> to vector<2x32xf32>
      %102 = arith.negf %101 : vector<2x32xf32>
      %103 = math.exp %102 : vector<2x32xf32>
      %cst_42 = arith.constant 1.000000e+00 : f32
      %104 = vector.broadcast %cst_42 : f32 to vector<2x32xf32>
      %105 = arith.addf %104, %103 : vector<2x32xf32>
      %106 = arith.divf %104, %105 : vector<2x32xf32>
      %107 = vector.extract_strided_slice %94 {offsets = [0, 64], sizes = [2, 32], strides = [1, 1]} : vector<2x128xf32> to vector<2x32xf32>
      %108 = math.tanh %107 : vector<2x32xf32>
      %109 = vector.extract_strided_slice %94 {offsets = [0, 96], sizes = [2, 32], strides = [1, 1]} : vector<2x128xf32> to vector<2x32xf32>
      %110 = arith.negf %109 : vector<2x32xf32>
      %111 = math.exp %110 : vector<2x32xf32>
      %cst_43 = arith.constant 1.000000e+00 : f32
      %112 = vector.broadcast %cst_43 : f32 to vector<2x32xf32>
      %113 = arith.addf %112, %111 : vector<2x32xf32>
      %114 = arith.divf %112, %113 : vector<2x32xf32>
      %115 = arith.mulf %106, %87 : vector<2x32xf32>
      %116 = arith.mulf %100, %108 : vector<2x32xf32>
      %117 = arith.addf %115, %116 : vector<2x32xf32>
      %118 = math.tanh %117 : vector<2x32xf32>
      %119 = arith.mulf %114, %118 : vector<2x32xf32>
      %c3_i32 = arith.constant 3 : i32
      %120 = arith.index_cast %c3_i32 : i32 to index
      %c0_44 = arith.constant 0 : index
      %c0_45 = arith.constant 0 : index
      %121 = vector.load %arg9[%120, %c0_44, %c0_45] : memref<12x2x128xf32, #tpu.memory_space<vmem>>, vector<1x2x128xf32>
      %122 = vector.shape_cast %121 : vector<1x2x128xf32> to vector<2x128xf32>
      %cst_46 = arith.constant dense<0.000000e+00> : vector<2x128xf32>
      %123 = tpu.matmul %119, %11, %cst_46 {dimension_numbers = #tpu.dot_dimension_numbers<[1], [0], [0], [1], [0, 0, 1, 1], [], []>} : vector<2x32xf32>, vector<32x128xf32>, vector<2x128xf32> -> vector<2x128xf32>
      %124 = arith.addf %122, %123 : vector<2x128xf32>
      %125 = vector.extract_strided_slice %124 {offsets = [0, 0], sizes = [2, 32], strides = [1, 1]} : vector<2x128xf32> to vector<2x32xf32>
      %126 = arith.negf %125 : vector<2x32xf32>
      %127 = math.exp %126 : vector<2x32xf32>
      %cst_47 = arith.constant 1.000000e+00 : f32
      %128 = vector.broadcast %cst_47 : f32 to vector<2x32xf32>
      %129 = arith.addf %128, %127 : vector<2x32xf32>
      %130 = arith.divf %128, %129 : vector<2x32xf32>
      %131 = vector.extract_strided_slice %124 {offsets = [0, 32], sizes = [2, 32], strides = [1, 1]} : vector<2x128xf32> to vector<2x32xf32>
      %132 = arith.negf %131 : vector<2x32xf32>
      %133 = math.exp %132 : vector<2x32xf32>
      %cst_48 = arith.constant 1.000000e+00 : f32
      %134 = vector.broadcast %cst_48 : f32 to vector<2x32xf32>
      %135 = arith.addf %134, %133 : vector<2x32xf32>
      %136 = arith.divf %134, %135 : vector<2x32xf32>
      %137 = vector.extract_strided_slice %124 {offsets = [0, 64], sizes = [2, 32], strides = [1, 1]} : vector<2x128xf32> to vector<2x32xf32>
      %138 = math.tanh %137 : vector<2x32xf32>
      %139 = vector.extract_strided_slice %124 {offsets = [0, 96], sizes = [2, 32], strides = [1, 1]} : vector<2x128xf32> to vector<2x32xf32>
      %140 = arith.negf %139 : vector<2x32xf32>
      %141 = math.exp %140 : vector<2x32xf32>
      %cst_49 = arith.constant 1.000000e+00 : f32
      %142 = vector.broadcast %cst_49 : f32 to vector<2x32xf32>
      %143 = arith.addf %142, %141 : vector<2x32xf32>
      %144 = arith.divf %142, %143 : vector<2x32xf32>
      %145 = arith.mulf %136, %117 : vector<2x32xf32>
      %146 = arith.mulf %130, %138 : vector<2x32xf32>
      %147 = arith.addf %145, %146 : vector<2x32xf32>
      %148 = math.tanh %147 : vector<2x32xf32>
      %149 = arith.mulf %144, %148 : vector<2x32xf32>
      %c4_i32_50 = arith.constant 4 : i32
      %150 = arith.index_cast %c4_i32_50 : i32 to index
      %c0_51 = arith.constant 0 : index
      %c0_52 = arith.constant 0 : index
      %151 = vector.load %arg9[%150, %c0_51, %c0_52] : memref<12x2x128xf32, #tpu.memory_space<vmem>>, vector<1x2x128xf32>
      %152 = vector.shape_cast %151 : vector<1x2x128xf32> to vector<2x128xf32>
      %cst_53 = arith.constant dense<0.000000e+00> : vector<2x128xf32>
      %153 = tpu.matmul %149, %11, %cst_53 {dimension_numbers = #tpu.dot_dimension_numbers<[1], [0], [0], [1], [0, 0, 1, 1], [], []>} : vector<2x32xf32>, vector<32x128xf32>, vector<2x128xf32> -> vector<2x128xf32>
      %154 = arith.addf %152, %153 : vector<2x128xf32>
      %155 = vector.extract_strided_slice %154 {offsets = [0, 0], sizes = [2, 32], strides = [1, 1]} : vector<2x128xf32> to vector<2x32xf32>
      %156 = arith.negf %155 : vector<2x32xf32>
      %157 = math.exp %156 : vector<2x32xf32>
      %cst_54 = arith.constant 1.000000e+00 : f32
      %158 = vector.broadcast %cst_54 : f32 to vector<2x32xf32>
      %159 = arith.addf %158, %157 : vector<2x32xf32>
      %160 = arith.divf %158, %159 : vector<2x32xf32>
      %161 = vector.extract_strided_slice %154 {offsets = [0, 32], sizes = [2, 32], strides = [1, 1]} : vector<2x128xf32> to vector<2x32xf32>
      %162 = arith.negf %161 : vector<2x32xf32>
      %163 = math.exp %162 : vector<2x32xf32>
      %cst_55 = arith.constant 1.000000e+00 : f32
      %164 = vector.broadcast %cst_55 : f32 to vector<2x32xf32>
      %165 = arith.addf %164, %163 : vector<2x32xf32>
      %166 = arith.divf %164, %165 : vector<2x32xf32>
      %167 = vector.extract_strided_slice %154 {offsets = [0, 64], sizes = [2, 32], strides = [1, 1]} : vector<2x128xf32> to vector<2x32xf32>
      %168 = math.tanh %167 : vector<2x32xf32>
      %169 = vector.extract_strided_slice %154 {offsets = [0, 96], sizes = [2, 32], strides = [1, 1]} : vector<2x128xf32> to vector<2x32xf32>
      %170 = arith.negf %169 : vector<2x32xf32>
      %171 = math.exp %170 : vector<2x32xf32>
      %cst_56 = arith.constant 1.000000e+00 : f32
      %172 = vector.broadcast %cst_56 : f32 to vector<2x32xf32>
      %173 = arith.addf %172, %171 : vector<2x32xf32>
      %174 = arith.divf %172, %173 : vector<2x32xf32>
      %175 = arith.mulf %166, %147 : vector<2x32xf32>
      %176 = arith.mulf %160, %168 : vector<2x32xf32>
      %177 = arith.addf %175, %176 : vector<2x32xf32>
      %178 = math.tanh %177 : vector<2x32xf32>
      %179 = arith.mulf %174, %178 : vector<2x32xf32>
      %c5_i32 = arith.constant 5 : i32
      %180 = arith.index_cast %c5_i32 : i32 to index
      %c0_57 = arith.constant 0 : index
      %c0_58 = arith.constant 0 : index
      %181 = vector.load %arg9[%180, %c0_57, %c0_58] : memref<12x2x128xf32, #tpu.memory_space<vmem>>, vector<1x2x128xf32>
      %182 = vector.shape_cast %181 : vector<1x2x128xf32> to vector<2x128xf32>
      %cst_59 = arith.constant dense<0.000000e+00> : vector<2x128xf32>
      %183 = tpu.matmul %179, %11, %cst_59 {dimension_numbers = #tpu.dot_dimension_numbers<[1], [0], [0], [1], [0, 0, 1, 1], [], []>} : vector<2x32xf32>, vector<32x128xf32>, vector<2x128xf32> -> vector<2x128xf32>
      %184 = arith.addf %182, %183 : vector<2x128xf32>
      %185 = vector.extract_strided_slice %184 {offsets = [0, 0], sizes = [2, 32], strides = [1, 1]} : vector<2x128xf32> to vector<2x32xf32>
      %186 = arith.negf %185 : vector<2x32xf32>
      %187 = math.exp %186 : vector<2x32xf32>
      %cst_60 = arith.constant 1.000000e+00 : f32
      %188 = vector.broadcast %cst_60 : f32 to vector<2x32xf32>
      %189 = arith.addf %188, %187 : vector<2x32xf32>
      %190 = arith.divf %188, %189 : vector<2x32xf32>
      %191 = vector.extract_strided_slice %184 {offsets = [0, 32], sizes = [2, 32], strides = [1, 1]} : vector<2x128xf32> to vector<2x32xf32>
      %192 = arith.negf %191 : vector<2x32xf32>
      %193 = math.exp %192 : vector<2x32xf32>
      %cst_61 = arith.constant 1.000000e+00 : f32
      %194 = vector.broadcast %cst_61 : f32 to vector<2x32xf32>
      %195 = arith.addf %194, %193 : vector<2x32xf32>
      %196 = arith.divf %194, %195 : vector<2x32xf32>
      %197 = vector.extract_strided_slice %184 {offsets = [0, 64], sizes = [2, 32], strides = [1, 1]} : vector<2x128xf32> to vector<2x32xf32>
      %198 = math.tanh %197 : vector<2x32xf32>
      %199 = vector.extract_strided_slice %184 {offsets = [0, 96], sizes = [2, 32], strides = [1, 1]} : vector<2x128xf32> to vector<2x32xf32>
      %200 = arith.negf %199 : vector<2x32xf32>
      %201 = math.exp %200 : vector<2x32xf32>
      %cst_62 = arith.constant 1.000000e+00 : f32
      %202 = vector.broadcast %cst_62 : f32 to vector<2x32xf32>
      %203 = arith.addf %202, %201 : vector<2x32xf32>
      %204 = arith.divf %202, %203 : vector<2x32xf32>
      %205 = arith.mulf %196, %177 : vector<2x32xf32>
      %206 = arith.mulf %190, %198 : vector<2x32xf32>
      %207 = arith.addf %205, %206 : vector<2x32xf32>
      %208 = math.tanh %207 : vector<2x32xf32>
      %209 = arith.mulf %204, %208 : vector<2x32xf32>
      %c6_i32 = arith.constant 6 : i32
      %210 = arith.index_cast %c6_i32 : i32 to index
      %c0_63 = arith.constant 0 : index
      %c0_64 = arith.constant 0 : index
      %211 = vector.load %arg9[%210, %c0_63, %c0_64] : memref<12x2x128xf32, #tpu.memory_space<vmem>>, vector<1x2x128xf32>
      %212 = vector.shape_cast %211 : vector<1x2x128xf32> to vector<2x128xf32>
      %cst_65 = arith.constant dense<0.000000e+00> : vector<2x128xf32>
      %213 = tpu.matmul %209, %11, %cst_65 {dimension_numbers = #tpu.dot_dimension_numbers<[1], [0], [0], [1], [0, 0, 1, 1], [], []>} : vector<2x32xf32>, vector<32x128xf32>, vector<2x128xf32> -> vector<2x128xf32>
      %214 = arith.addf %212, %213 : vector<2x128xf32>
      %215 = vector.extract_strided_slice %214 {offsets = [0, 0], sizes = [2, 32], strides = [1, 1]} : vector<2x128xf32> to vector<2x32xf32>
      %216 = arith.negf %215 : vector<2x32xf32>
      %217 = math.exp %216 : vector<2x32xf32>
      %cst_66 = arith.constant 1.000000e+00 : f32
      %218 = vector.broadcast %cst_66 : f32 to vector<2x32xf32>
      %219 = arith.addf %218, %217 : vector<2x32xf32>
      %220 = arith.divf %218, %219 : vector<2x32xf32>
      %221 = vector.extract_strided_slice %214 {offsets = [0, 32], sizes = [2, 32], strides = [1, 1]} : vector<2x128xf32> to vector<2x32xf32>
      %222 = arith.negf %221 : vector<2x32xf32>
      %223 = math.exp %222 : vector<2x32xf32>
      %cst_67 = arith.constant 1.000000e+00 : f32
      %224 = vector.broadcast %cst_67 : f32 to vector<2x32xf32>
      %225 = arith.addf %224, %223 : vector<2x32xf32>
      %226 = arith.divf %224, %225 : vector<2x32xf32>
      %227 = vector.extract_strided_slice %214 {offsets = [0, 64], sizes = [2, 32], strides = [1, 1]} : vector<2x128xf32> to vector<2x32xf32>
      %228 = math.tanh %227 : vector<2x32xf32>
      %229 = vector.extract_strided_slice %214 {offsets = [0, 96], sizes = [2, 32], strides = [1, 1]} : vector<2x128xf32> to vector<2x32xf32>
      %230 = arith.negf %229 : vector<2x32xf32>
      %231 = math.exp %230 : vector<2x32xf32>
      %cst_68 = arith.constant 1.000000e+00 : f32
      %232 = vector.broadcast %cst_68 : f32 to vector<2x32xf32>
      %233 = arith.addf %232, %231 : vector<2x32xf32>
      %234 = arith.divf %232, %233 : vector<2x32xf32>
      %235 = arith.mulf %226, %207 : vector<2x32xf32>
      %236 = arith.mulf %220, %228 : vector<2x32xf32>
      %237 = arith.addf %235, %236 : vector<2x32xf32>
      %238 = math.tanh %237 : vector<2x32xf32>
      %239 = arith.mulf %234, %238 : vector<2x32xf32>
      %c7_i32 = arith.constant 7 : i32
      %240 = arith.index_cast %c7_i32 : i32 to index
      %c0_69 = arith.constant 0 : index
      %c0_70 = arith.constant 0 : index
      %241 = vector.load %arg9[%240, %c0_69, %c0_70] : memref<12x2x128xf32, #tpu.memory_space<vmem>>, vector<1x2x128xf32>
      %242 = vector.shape_cast %241 : vector<1x2x128xf32> to vector<2x128xf32>
      %cst_71 = arith.constant dense<0.000000e+00> : vector<2x128xf32>
      %243 = tpu.matmul %239, %11, %cst_71 {dimension_numbers = #tpu.dot_dimension_numbers<[1], [0], [0], [1], [0, 0, 1, 1], [], []>} : vector<2x32xf32>, vector<32x128xf32>, vector<2x128xf32> -> vector<2x128xf32>
      %244 = arith.addf %242, %243 : vector<2x128xf32>
      %245 = vector.extract_strided_slice %244 {offsets = [0, 0], sizes = [2, 32], strides = [1, 1]} : vector<2x128xf32> to vector<2x32xf32>
      %246 = arith.negf %245 : vector<2x32xf32>
      %247 = math.exp %246 : vector<2x32xf32>
      %cst_72 = arith.constant 1.000000e+00 : f32
      %248 = vector.broadcast %cst_72 : f32 to vector<2x32xf32>
      %249 = arith.addf %248, %247 : vector<2x32xf32>
      %250 = arith.divf %248, %249 : vector<2x32xf32>
      %251 = vector.extract_strided_slice %244 {offsets = [0, 32], sizes = [2, 32], strides = [1, 1]} : vector<2x128xf32> to vector<2x32xf32>
      %252 = arith.negf %251 : vector<2x32xf32>
      %253 = math.exp %252 : vector<2x32xf32>
      %cst_73 = arith.constant 1.000000e+00 : f32
      %254 = vector.broadcast %cst_73 : f32 to vector<2x32xf32>
      %255 = arith.addf %254, %253 : vector<2x32xf32>
      %256 = arith.divf %254, %255 : vector<2x32xf32>
      %257 = vector.extract_strided_slice %244 {offsets = [0, 64], sizes = [2, 32], strides = [1, 1]} : vector<2x128xf32> to vector<2x32xf32>
      %258 = math.tanh %257 : vector<2x32xf32>
      %259 = vector.extract_strided_slice %244 {offsets = [0, 96], sizes = [2, 32], strides = [1, 1]} : vector<2x128xf32> to vector<2x32xf32>
      %260 = arith.negf %259 : vector<2x32xf32>
      %261 = math.exp %260 : vector<2x32xf32>
      %cst_74 = arith.constant 1.000000e+00 : f32
      %262 = vector.broadcast %cst_74 : f32 to vector<2x32xf32>
      %263 = arith.addf %262, %261 : vector<2x32xf32>
      %264 = arith.divf %262, %263 : vector<2x32xf32>
      %265 = arith.mulf %256, %237 : vector<2x32xf32>
      %266 = arith.mulf %250, %258 : vector<2x32xf32>
      %267 = arith.addf %265, %266 : vector<2x32xf32>
      %268 = math.tanh %267 : vector<2x32xf32>
      %269 = arith.mulf %264, %268 : vector<2x32xf32>
      %c8_i32 = arith.constant 8 : i32
      %c8_i32_75 = arith.constant 8 : i32
      %270 = arith.addi %c8_i32_75, %arg10 : i32
      %c8_i32_76 = arith.constant 8 : i32
      %271 = arith.subi %270, %c8_i32_76 : i32
      %272 = arith.addi %c8_i32_76, %271 : i32
      %c1_i32_77 = arith.constant 1 : i32
      %273:2 = scf.for %arg11 = %c8_i32_76 to %272 step %c1_i32_77 iter_args(%arg12 = %269, %arg13 = %267) -> (vector<2x32xf32>, vector<2x32xf32>)  : i32 {
        %293 = arith.index_cast %arg11 : i32 to index
        %c0_87 = arith.constant 0 : index
        %c0_88 = arith.constant 0 : index
        %294 = vector.load %arg9[%293, %c0_87, %c0_88] : memref<12x2x128xf32, #tpu.memory_space<vmem>>, vector<1x2x128xf32>
        %295 = vector.shape_cast %294 : vector<1x2x128xf32> to vector<2x128xf32>
        %cst_89 = arith.constant dense<0.000000e+00> : vector<2x128xf32>
        %296 = tpu.matmul %arg12, %11, %cst_89 {dimension_numbers = #tpu.dot_dimension_numbers<[1], [0], [0], [1], [0, 0, 1, 1], [], []>} : vector<2x32xf32>, vector<32x128xf32>, vector<2x128xf32> -> vector<2x128xf32>
        %297 = arith.addf %295, %296 : vector<2x128xf32>
        %298 = vector.extract_strided_slice %297 {offsets = [0, 0], sizes = [2, 32], strides = [1, 1]} : vector<2x128xf32> to vector<2x32xf32>
        %299 = arith.negf %298 : vector<2x32xf32>
        %300 = math.exp %299 : vector<2x32xf32>
        %cst_90 = arith.constant 1.000000e+00 : f32
        %301 = vector.broadcast %cst_90 : f32 to vector<2x32xf32>
        %302 = arith.addf %301, %300 : vector<2x32xf32>
        %303 = arith.divf %301, %302 : vector<2x32xf32>
        %304 = vector.extract_strided_slice %297 {offsets = [0, 32], sizes = [2, 32], strides = [1, 1]} : vector<2x128xf32> to vector<2x32xf32>
        %305 = arith.negf %304 : vector<2x32xf32>
        %306 = math.exp %305 : vector<2x32xf32>
        %cst_91 = arith.constant 1.000000e+00 : f32
        %307 = vector.broadcast %cst_91 : f32 to vector<2x32xf32>
        %308 = arith.addf %307, %306 : vector<2x32xf32>
        %309 = arith.divf %307, %308 : vector<2x32xf32>
        %310 = vector.extract_strided_slice %297 {offsets = [0, 64], sizes = [2, 32], strides = [1, 1]} : vector<2x128xf32> to vector<2x32xf32>
        %311 = math.tanh %310 : vector<2x32xf32>
        %312 = vector.extract_strided_slice %297 {offsets = [0, 96], sizes = [2, 32], strides = [1, 1]} : vector<2x128xf32> to vector<2x32xf32>
        %313 = arith.negf %312 : vector<2x32xf32>
        %314 = math.exp %313 : vector<2x32xf32>
        %cst_92 = arith.constant 1.000000e+00 : f32
        %315 = vector.broadcast %cst_92 : f32 to vector<2x32xf32>
        %316 = arith.addf %315, %314 : vector<2x32xf32>
        %317 = arith.divf %315, %316 : vector<2x32xf32>
        %318 = arith.mulf %309, %arg13 : vector<2x32xf32>
        %319 = arith.mulf %303, %311 : vector<2x32xf32>
        %320 = arith.addf %318, %319 : vector<2x32xf32>
        %321 = math.tanh %320 : vector<2x32xf32>
        %322 = arith.mulf %317, %321 : vector<2x32xf32>
        scf.yield %322, %320 : vector<2x32xf32>, vector<2x32xf32>
      }
      %cst_78 = arith.constant dense<0.000000e+00> : vector<2x1xf32>
      %274 = tpu.matmul %273#0, %17, %cst_78 {dimension_numbers = #tpu.dot_dimension_numbers<[1], [0], [0], [1], [0, 0, 1, 1], [], []>} : vector<2x32xf32>, vector<32x1xf32>, vector<2x1xf32> -> vector<2x1xf32>
      %275 = vector.broadcast %20 : vector<1x1xf32> to vector<2x1xf32>
      %276 = arith.addf %274, %275 : vector<2x1xf32>
      %cst_79 = arith.constant 5.000000e-01 : f32
      %277 = vector.broadcast %cst_79 : f32 to vector<2x1xf32>
      %278 = arith.subf %276, %277 : vector<2x1xf32>
      %279 = arith.negf %278 : vector<2x1xf32>
      %280 = math.exp %279 : vector<2x1xf32>
      %cst_80 = arith.constant 1.000000e+00 : f32
      %281 = vector.broadcast %cst_80 : f32 to vector<2x1xf32>
      %282 = arith.addf %281, %280 : vector<2x1xf32>
      %283 = arith.divf %281, %282 : vector<2x1xf32>
      %284 = vector.shape_cast %283 : vector<2x1xf32> to vector<1x2x1xf32>
      %c8_i32_81 = arith.constant 8 : i32
      %285 = arith.addi %c8_i32_81, %arg10 : i32
      %286 = arith.index_cast %285 : i32 to index
      %c0_82 = arith.constant 0 : index
      %c0_83 = arith.constant 0 : index
      %287 = vector.load %arg8[%286, %c0_82, %c0_83] : memref<12x2x1xf32, #tpu.memory_space<vmem>>, vector<1x2x1xf32>
      tpu.vector_store %arg8[%286, %c0_82, %c0_83], %284 {strides = array<i32>} : memref<12x2x1xf32, #tpu.memory_space<vmem>>, vector<1x2x1xf32>,
      %288 = vector.shape_cast %283 : vector<2x1xf32> to vector<1x2x1xf32>
      %c0_84 = arith.constant 0 : index
      %289 = arith.index_cast %arg10 : i32 to index
      %c0_85 = arith.constant 0 : index
      %c0_86 = arith.constant 0 : index
      %290 = vector.load %arg7[%c0_84, %289, %c0_85, %c0_86] : memref<1x4x2x1xf32, #tpu.memory_space<vmem>>, vector<1x1x2x1xf32>
      %291 = vector.shape_cast %290 : vector<1x1x2x1xf32> to vector<1x2x1xf32>
      %292 = vector.shape_cast %288 : vector<1x2x1xf32> to vector<1x1x2x1xf32>
      tpu.vector_store %arg7[%c0_84, %289, %c0_85, %c0_86], %292 {strides = array<i32>} : memref<1x4x2x1xf32, #tpu.memory_space<vmem>>, vector<1x1x2x1xf32>,
    }
    %c4_i32_7 = arith.constant 4 : i32
    return
  }
  func.func @transform_0(%arg0: i32) -> (i32, i32, i32, i32) {
    %c0_i32 = arith.constant 0 : i32
    %c0_i32_0 = arith.constant 0 : i32
    %c0_i32_1 = arith.constant 0 : i32
    %c0_i32_2 = arith.constant 0 : i32
    return %arg0, %c0_i32, %c0_i32_0, %c0_i32_1 : i32, i32, i32, i32
  }
  func.func @transform_1(%arg0: i32) -> (i32, i32, i32) {
    %c0_i32 = arith.constant 0 : i32
    %c0_i32_0 = arith.constant 0 : i32
    %c0_i32_1 = arith.constant 0 : i32
    %c0_i32_2 = arith.constant 0 : i32
    return %c0_i32, %c0_i32_0, %c0_i32_1 : i32, i32, i32
  }
  func.func @transform_2(%arg0: i32) -> (i32, i32, i32) {
    %c0_i32 = arith.constant 0 : i32
    %c0_i32_0 = arith.constant 0 : i32
    %c0_i32_1 = arith.constant 0 : i32
    %c0_i32_2 = arith.constant 0 : i32
    return %c0_i32, %c0_i32_0, %c0_i32_1 : i32, i32, i32
  }
  func.func @transform_3(%arg0: i32) -> (i32, i32, i32) {
    %c0_i32 = arith.constant 0 : i32
    %c0_i32_0 = arith.constant 0 : i32
    %c0_i32_1 = arith.constant 0 : i32
    %c0_i32_2 = arith.constant 0 : i32
    return %c0_i32, %c0_i32_0, %c0_i32_1 : i32, i32, i32
  }
  func.func @transform_4(%arg0: i32) -> (i32, i32, i32) {
    %c0_i32 = arith.constant 0 : i32
    %c0_i32_0 = arith.constant 0 : i32
    %c0_i32_1 = arith.constant 0 : i32
    %c0_i32_2 = arith.constant 0 : i32
    return %c0_i32, %c0_i32_0, %c0_i32_1 : i32, i32, i32
  }
  func.func @transform_5(%arg0: i32) -> (i32, i32, i32) {
    %c0_i32 = arith.constant 0 : i32
    %c0_i32_0 = arith.constant 0 : i32
    %c0_i32_1 = arith.constant 0 : i32
    %c0_i32_2 = arith.constant 0 : i32
    return %c0_i32, %c0_i32_0, %c0_i32_1 : i32, i32, i32
  }
  func.func @transform_6(%arg0: i32) -> (i32, i32, i32, i32) {
    %c0_i32 = arith.constant 0 : i32
    %c0_i32_0 = arith.constant 0 : i32
    %c0_i32_1 = arith.constant 0 : i32
    %c0_i32_2 = arith.constant 0 : i32
    return %arg0, %c0_i32, %c0_i32_0, %c0_i32_1 : i32, i32, i32, i32
  }
}

</mosaic_0001>

<bundles_post_ra>
// kernel: tpu_custom_call.1
= control target key start
LH: loop header
LB: loop body
LE: loop exit
PB: predicated region body
PF: predicated region fallthrough
CT: control target
= control target key end

     0   :  { %vm31_vm0 = vcmask 1024   ;;  %s1669_s13 = smov 0   ;;  %s1899_s0 = inlined_call_operand.vmem [shape: f32[1,8,2,1], index: 0, kind: input, shape index: {}]   ;;  %s1900_s1 = inlined_call_operand.vmem [shape: f32[4,1,128], index: 1, kind: input, shape index: {}]   ;;  %s1901_s2 = inlined_call_operand.vmem [shape: f32[4,32,128], index: 2, kind: input, shape index: {}]   ;;  %s1902_s3 = inlined_call_operand.vmem [shape: f32[4,1,128], index: 3, kind: input, shape index: {}]   ;;  %s1903_s4 = inlined_call_operand.vmem [shape: f32[4,32,1], index: 4, kind: input, shape index: {}]   ;;  %s1904_s5 = inlined_call_operand.vmem [shape: f32[4,1,1], index: 5, kind: input, shape index: {}]   ;;  %s1905_s6 = inlined_call_operand.vmem [shape: f32[1,4,2,1], index: 6, kind: output, shape index: {}]  }
   0x1   :  { %v23_v0 = vld [vmem:[%s1899_s0] sm:$0x3]  ;;  %v24_v1 = vld [vmem:[%s1899_s0 + $0x2] sm:$0x3]  ;;  %v25_v2 = vld [vmem:[%s1899_s0 + $0x4] sm:$0x3] }
   0x2   :  { %32 = vst.msk [vmem:[#allocation2] sm:$0x3] %vm31_vm0, %v23_v0  ;;  %33 = vst.msk [vmem:[#allocation2 + $0x2] sm:$0x3] %vm31_vm0, %v24_v1  ;;  %v26_v3 = vld [vmem:[%s1899_s0 + $0x6] sm:$0x3] }
   0x3   :  { %34 = vst.msk [vmem:[#allocation2 + $0x4] sm:$0x3] %vm31_vm0, %v25_v2  ;;  %v27_v4 = vld [vmem:[%s1899_s0 + $0x8] sm:$0x3]  ;;  %v28_v5 = vld [vmem:[%s1899_s0 + $0xa] sm:$0x3] }
   0x4   :  { %35 = vst.msk [vmem:[#allocation2 + $0x6] sm:$0x3] %vm31_vm0, %v26_v3  ;;  %36 = vst.msk [vmem:[#allocation2 + $0x8] sm:$0x3] %vm31_vm0, %v27_v4  ;;  %v29_v6 = vld [vmem:[%s1899_s0 + $0xc] sm:$0x3] }
   0x5   :  { %37 = vst.msk [vmem:[#allocation2 + $0xa] sm:$0x3] %vm31_vm0, %v28_v5  ;;  %v30_v7 = vld [vmem:[%s1899_s0 + $0xe] sm:$0x3]  ;;  %38 = vst.msk [vmem:[#allocation2 + $0xc] sm:$0x3] %vm31_vm0, %v29_v6 }
   0x6   :  { %39 = vst.msk [vmem:[#allocation2 + $0xe] sm:$0x3] %vm31_vm0, %v30_v7 }
   0x7 LB: > { %v1593_v9 = vmov 0.0   ;;  %vm1594_vm1 = vmmov 0   ;;  %s1237_s0 = sshll.u32 %s1575_s13, 5  ;;  %v1595_v10 = vmov 0   ;;  %s61_s22 = scalar_lea.vmem %s1904_s5, %s1575_s13  ;;  %vm184_vm2 = vcmask 261120   ;;  %s1575_s13 = sphi %s1669_s13, %s45_s13  }
   0x8   : > { %1316 = vmatprep.subr.mxu0 %v1593_v9  ;;  %1324 = vmatprep.mubr.msk.f32.mxu0 %vm1594_vm1, %v1593_v9  ;;  %s49_s16 = scalar_lea.vmem %s1901_s2, %s1237_s0  ;;  %s56_s19 = scalar_lea.vmem %s1903_s4, %s1237_s0  ;;  %v1706_v17 = vld [vmem:[%s61_s22] ss:$0 sm:$0xff] }
   0x9   : > { %v63_v8 = vld [vmem:[#allocation2] sm:$0x3]  ;;  %1475 = vset.pattern.permute.xlu0 %v1595_v10  ;;  %1327 = vmatprep.subr.mxu1 %v1593_v9  ;;  %v1684_v11 = vld [vmem:[%s49_s16 + $0x18] sm:$0xff]  ;;  %v1693_v12 = vld [vmem:[%s49_s16 + $0x10] sm:$0xff]  ;;  %s997_s23 = sadd.s32 8, %s1575_s13  ;;  %s46_s26 = scalar_lea.vmem %s1900_s1, %s1575_s13 }
   0xa   : > { %77 = vperm.xlu0 %1475, %v63_v8   ;;  %1335 = vmatprep.mubr.msk.f32.mxu1 %vm1594_vm1, %v1593_v9  ;;  %v1695_v13 = vld [vmem:[%s56_s19] sm:$0xff]  ;;  %v1697_v14 = vld [vmem:[%s56_s19 + $0x8] sm:$0xff]  ;;  %v1699_v15 = vld [vmem:[%s56_s19 + $0x10] sm:$0xff]  ;;  %s54_s29 = scalar_lea.vmem %s1902_s3, %s1575_s13  ;;  %s1596_s30 = smov 64  }
   0xb   : > { %1476 = vset.pattern.permute.xlu1 %v1595_v10  ;;  %1317 = vmatpush3.msra.mxu0 %v1684_v11  ;;  %v1704_v16 = vld [vmem:[%s56_s19 + $0x18] sm:$0xff]  ;;  %v1709_v18 = vld [vmem:[%s49_s16 + $0x8] sm:$0xff]  ;;  %v1715_v19 = vld [vmem:[%s49_s16] sm:$0xff]  ;;  %s1597_s7 = smov 32   ;;  %p1255_p0 = scmp.le.s32.totalorder %s997_s23, 8 }
   0xc   : > { %1328 = vmatpush3.msra.mxu1 %v1684_v11  ;;  %1318 = vmatprep.subr.mxu0 %v1593_v9  ;;  %v1745_v20 = vld [vmem:[%s46_s26] ss:$0 sm:$0xff]  ;;  %v64_v40 = vld [vmem:[#allocation2 + $0x2] sm:$0x3]  ;;  %v65_v62 = vld [vmem:[#allocation2 + $0x4] sm:$0x3] }
   0xd   : > { %1329 = vmatprep.subr.mxu1 %v1593_v9  ;;  %1319 = vmatpush3.msra.mxu0 %v1693_v12  ;;  %v1747_v21 = vld [vmem:[%s54_s29] ss:$0 sm:$0xff]  ;;  %s1861_s8 = smov (!%p1255_p0), 8  }
   0xe   : > { %1330 = vmatpush3.msra.mxu1 %v1693_v12  ;;  %1320 = vmatprep.subr.mxu0 %v1593_v9 }
   0xf   : > { %1331 = vmatprep.subr.mxu1 %v1593_v9  ;;  %1321 = vmatpush3.msra.mxu0 %v1709_v18 }
  0x10   : > { %1332 = vmatpush3.msra.mxu1 %v1709_v18  ;;  %1322 = vmatprep.subr.mxu0 %v1593_v9 }
  0x11   : > { %1333 = vmatprep.subr.mxu1 %v1593_v9  ;;  %1323 = vmatpush3.msra.mxu0 %v1715_v19 }
  0x12   : > { %1334 = vmatpush3.msra.mxu1 %v1715_v19  ;;  %1325 = vmatmul.mubr.f32.vlgmr.msra.gmra.mxu0 %v1593_v9 }
  0x13   : > { %1338 = vmatprep.subr.mxu0 %v1593_v9  ;;  %1346 = vmatprep.mubr.msk.f32.mxu0 %vm1594_vm1, %v1593_v9 }
  0x14   : > { %1339 = vmatpush3.msra.mxu0 %v1684_v11  ;;  %1349 = vmatprep.subr.mxu1 %v1593_v9 }
  0x15   : > { %1340 = vmatprep.subr.mxu0 %v1593_v9 }
  0x16   : > { %1341 = vmatpush3.msra.mxu0 %v1693_v12 }
  0x17   : > { %1342 = vmatprep.subr.mxu0 %v1593_v9 }
  0x18   : > { %1343 = vmatpush3.msra.mxu0 %v1709_v18 }
  0x19   : > { %1344 = vmatprep.subr.mxu0 %v1593_v9 }
  0x1a   : > { %1345 = vmatpush3.msra.mxu0 %v1715_v19 }
  0x1b   : > { %1360 = vmatprep.subr.mxu0 %v1593_v9 }
  0x85   : > { %v78_v22 = vpop.permute.xlu0 %77 }
  0x86   : > { %v141_v23 = vmul.f32 %v1745_v20, %v78_v22 }
  0x88   : > { %v159_v24 = vadd.f32 %v1747_v21, %v141_v23 }
  0x8a   : > { %171 = vst [vmem:[#allocation3] sm:$0x3] %v159_v24 }
  0x91   : > { %v183_v25 = vld [vmem:[#allocation3] sm:$0x3] }
  0xd2   : > { %v254_v26 = vpop.f32.mrf.mxu0 }
  0xd3   : > { %v258_v27 = vadd.f32 %v254_v26, %v183_v25 }
  0xd4   : > { %v1326_v28 = vpop.f32.mrf.mxu0 }
  0xd5   : > { %1477 = vtanh.f32 %v258_v27  ;;  %v1240_v30 = vmul.f32 -1.442695, %v258_v27 }
  0xd7   : > { %1479 = vpow2.f32 %v1240_v30 }
  0xe2   : > { %v1478_v29 = vpop.eup %1477 }
  0xe3   : > { %268 = vrot.lane.b32.xlu0 %v1478_v29, %s1596_s30 }
  0xe4   : > { %v1480_v31 = vpop.eup %1479 }
  0xe5   : > { %v262_v32 = vadd.f32 1.0, %v1480_v31 }
  0xe7   : > { %1481 = vrcp.f32 %v262_v32  ;;  %v66_v32 = vld [vmem:[#allocation2 + $0x6] sm:$0x3] }
  0xf4   : > { %v1482_v33 = vpop.eup %1481 }
  0xf5   : > { %v266_v36 = vmul.f32 0.0, %v1482_v33 }
 0x155   : > { %v269_v34 = vpop.permute.xlu0 %268 }
 0x156   : > { %v271_v35 = vmul.f32 %v1482_v33, %v269_v34 }
 0x158   : > { %273 = vrot.lane.b32.xlu1 %v271_v35, %s1597_s7 }
 0x1ca   : > { %v274_v37 = vpop.permute.xlu1 %273 }
 0x1cb   : > { %v276_v38 = vadd.f32 %v274_v37, %v266_v36 }
 0x1cd   : > { %1483 = vtanh.f32 %v276_v38 }
 0x1da   : > { %v1484_v39 = vpop.eup %1483 }
 0x1db   : > { %279 = vrot.lane.b32.xlu1 %v1484_v39, %s1596_s30 }
 0x1df   : > { %82 = vperm.xlu1 %1476, %v64_v40  }
 0x24d   : > { %v280_v41 = vpop.permute.xlu1 %279 }
 0x24e   : > { %v282_v42 = vmul.f32 %v1482_v33, %v280_v41 }
 0x250   : > { %286 = vrot.lane.b32.xlu0 %v282_v42, %s1597_s7 }
 0x25a   : > { %v83_v43 = vpop.permute.xlu1 %82 }
 0x25b   : > { %v142_v44 = vmul.f32 %v1745_v20, %v83_v43 }
 0x25d   : > { %v160_v46 = vadd.f32 %v1747_v21, %v142_v44 }
 0x25f   : > { %172 = vst [vmem:[#allocation3 + $0x2] sm:$0x3] %v160_v46 }
 0x266   : > { %v284_v47 = vld [vmem:[#allocation3 + $0x2] sm:$0x3] }
 0x2c2   : > { %v287_v45 = vpop.permute.xlu0 %286 }
 0x2c3   : > { %1336 = vmatmul.mubr.msk.f32.vlgmr.msra.gmra.mxu1 %vm184_vm2, %v287_v45 }
 0x2c4   : > { %1350 = vmatpush3.msra.mxu1 %v1684_v11  ;;  %1357 = vmatprep.mubr.msk.f32.mxu1 %vm1594_vm1, %v1593_v9 }
 0x2c5   : > { %1351 = vmatprep.subr.mxu1 %v1593_v9 }
 0x2c6   : > { %1352 = vmatpush3.msra.mxu1 %v1693_v12 }
 0x2c7   : > { %1353 = vmatprep.subr.mxu1 %v1593_v9 }
 0x2c8   : > { %1354 = vmatpush3.msra.mxu1 %v1709_v18 }
 0x2c9   : > { %1355 = vmatprep.subr.mxu1 %v1593_v9 }
 0x2ca   : > { %1356 = vmatpush3.msra.mxu1 %v1715_v19 }
 0x2cb   : > { %1371 = vmatprep.subr.mxu1 %v1593_v9 }
 0x383   : > { %v356_v48 = vpop.f32.mrf.mxu1 }
 0x384   : > { %v360_v49 = vadd.f32 %v356_v48, %v284_v47 }
 0x385   : > { %v1337_v50 = vpop.f32.mrf.mxu1 }
 0x386   : > { %1485 = vtanh.f32 %v360_v49  ;;  %v1242_v52 = vmul.f32 -1.442695, %v360_v49 }
 0x388   : > { %1487 = vpow2.f32 %v1242_v52 }
 0x393   : > { %v1486_v51 = vpop.eup %1485 }
 0x394   : > { %370 = vrot.lane.b32.xlu0 %v1486_v51, %s1596_s30 }
 0x395   : > { %v1488_v53 = vpop.eup %1487 }
 0x396   : > { %v364_v54 = vadd.f32 1.0, %v1488_v53 }
 0x398   : > { %1489 = vrcp.f32 %v364_v54  ;;  %v67_v54 = vld [vmem:[#allocation2 + $0x8] sm:$0x3] }
 0x3a5   : > { %v1490_v55 = vpop.eup %1489 }
 0x3a6   : > { %v368_v58 = vmul.f32 %v1490_v55, %v276_v38 }
 0x406   : > { %v371_v56 = vpop.permute.xlu0 %370 }
 0x407   : > { %v373_v57 = vmul.f32 %v1490_v55, %v371_v56 }
 0x409   : > { %375 = vrot.lane.b32.xlu1 %v373_v57, %s1597_s7 }
 0x47b   : > { %v376_v59 = vpop.permute.xlu1 %375 }
 0x47c   : > { %v378_v60 = vadd.f32 %v376_v59, %v368_v58 }
 0x47e   : > { %1491 = vtanh.f32 %v378_v60 }
 0x48b   : > { %v1492_v61 = vpop.eup %1491 }
 0x48c   : > { %381 = vrot.lane.b32.xlu0 %v1492_v61, %s1596_s30 }
 0x490   : > { %87 = vperm.xlu0 %1475, %v65_v62  }
 0x4fe   : > { %v382_v63 = vpop.permute.xlu0 %381 }
 0x4ff   : > { %v384_v0 = vmul.f32 %v1490_v55, %v382_v63 }
 0x501   : > { %388 = vrot.lane.b32.xlu1 %v384_v0, %s1597_s7 }
 0x50b   : > { %v88_v1 = vpop.permute.xlu0 %87 }
 0x50c   : > { %v143_v2 = vmul.f32 %v1745_v20, %v88_v1 }
 0x50e   : > { %v161_v3 = vadd.f32 %v1747_v21, %v143_v2 }
 0x510   : > { %173 = vst [vmem:[#allocation3 + $0x4] sm:$0x3] %v161_v3 }
 0x517   : > { %v386_v5 = vld [vmem:[#allocation3 + $0x4] sm:$0x3] }
 0x573   : > { %v389_v4 = vpop.permute.xlu1 %388 }
 0x574   : > { %1347 = vmatmul.mubr.msk.f32.vlgmr.msra.gmra.mxu0 %vm184_vm2, %v389_v4 }
 0x575   : > { %1361 = vmatpush3.msra.mxu0 %v1684_v11  ;;  %1368 = vmatprep.mubr.msk.f32.mxu0 %vm1594_vm1, %v1593_v9 }
 0x576   : > { %1362 = vmatprep.subr.mxu0 %v1593_v9 }
 0x577   : > { %1363 = vmatpush3.msra.mxu0 %v1693_v12 }
 0x578   : > { %1364 = vmatprep.subr.mxu0 %v1593_v9 }
 0x579   : > { %1365 = vmatpush3.msra.mxu0 %v1709_v18 }
 0x57a   : > { %1366 = vmatprep.subr.mxu0 %v1593_v9 }
 0x57b   : > { %1367 = vmatpush3.msra.mxu0 %v1715_v19 }
 0x57c   : > { %1382 = vmatprep.subr.mxu0 %v1593_v9 }
 0x634   : > { %v458_v6 = vpop.f32.mrf.mxu0 }
 0x635   : > { %v462_v7 = vadd.f32 %v458_v6, %v386_v5 }
 0x636   : > { %v1348_v8 = vpop.f32.mrf.mxu0 }
 0x637   : > { %1493 = vtanh.f32 %v462_v7  ;;  %v1244_v22 = vmul.f32 -1.442695, %v462_v7 }
 0x639   : > { %1495 = vpow2.f32 %v1244_v22 }
 0x644   : > { %v1494_v10 = vpop.eup %1493 }
 0x645   : > { %472 = vrot.lane.b32.xlu1 %v1494_v10, %s1596_s30 }
 0x646   : > { %v1496_v23 = vpop.eup %1495 }
 0x647   : > { %v466_v24 = vadd.f32 1.0, %v1496_v23 }
 0x649   : > { %1497 = vrcp.f32 %v466_v24  ;;  %v68_v24 = vld [vmem:[#allocation2 + $0xa] sm:$0x3] }
 0x656   : > { %v1498_v25 = vpop.eup %1497 }
 0x657   : > { %v470_v28 = vmul.f32 %v1498_v25, %v378_v60 }
 0x6b7   : > { %v473_v26 = vpop.permute.xlu1 %472 }
 0x6b8   : > { %v475_v27 = vmul.f32 %v1498_v25, %v473_v26 }
 0x6ba   : > { %477 = vrot.lane.b32.xlu0 %v475_v27, %s1597_s7 }
 0x72c   : > { %v478_v29 = vpop.permute.xlu0 %477 }
 0x72d   : > { %v480_v30 = vadd.f32 %v478_v29, %v470_v28 }
 0x72f   : > { %1499 = vtanh.f32 %v480_v30 }
 0x73c   : > { %v1500_v31 = vpop.eup %1499 }
 0x73d   : > { %483 = vrot.lane.b32.xlu1 %v1500_v31, %s1596_s30 }
 0x741   : > { %92 = vperm.xlu1 %1476, %v66_v32  }
 0x7af   : > { %v484_v33 = vpop.permute.xlu1 %483 }
 0x7b0   : > { %v486_v34 = vmul.f32 %v1498_v25, %v484_v33 }
 0x7b2   : > { %490 = vrot.lane.b32.xlu0 %v486_v34, %s1597_s7 }
 0x7bc   : > { %v93_v35 = vpop.permute.xlu1 %92 }
 0x7bd   : > { %v144_v36 = vmul.f32 %v1745_v20, %v93_v35 }
 0x7bf   : > { %v162_v37 = vadd.f32 %v1747_v21, %v144_v36 }
 0x7c1   : > { %174 = vst [vmem:[#allocation3 + $0x6] sm:$0x3] %v162_v37 }
 0x7c8   : > { %v488_v39 = vld [vmem:[#allocation3 + $0x6] sm:$0x3] }
 0x824   : > { %v491_v38 = vpop.permute.xlu0 %490 }
 0x825   : > { %1358 = vmatmul.mubr.msk.f32.vlgmr.msra.gmra.mxu1 %vm184_vm2, %v491_v38 }
 0x826   : > { %1372 = vmatpush3.msra.mxu1 %v1684_v11  ;;  %1379 = vmatprep.mubr.msk.f32.mxu1 %vm1594_vm1, %v1593_v9 }
 0x827   : > { %1373 = vmatprep.subr.mxu1 %v1593_v9 }
 0x828   : > { %1374 = vmatpush3.msra.mxu1 %v1693_v12 }
 0x829   : > { %1375 = vmatprep.subr.mxu1 %v1593_v9 }
 0x82a   : > { %1376 = vmatpush3.msra.mxu1 %v1709_v18 }
 0x82b   : > { %1377 = vmatprep.subr.mxu1 %v1593_v9 }
 0x82c   : > { %1378 = vmatpush3.msra.mxu1 %v1715_v19 }
 0x82d   : > { %1393 = vmatprep.subr.mxu1 %v1593_v9 }
 0x8e5   : > { %v560_v40 = vpop.f32.mrf.mxu1 }
 0x8e6   : > { %v564_v41 = vadd.f32 %v560_v40, %v488_v39 }
 0x8e7   : > { %v1359_v42 = vpop.f32.mrf.mxu1 }
 0x8e8   : > { %1501 = vtanh.f32 %v564_v41  ;;  %v1246_v44 = vmul.f32 -1.442695, %v564_v41 }
 0x8ea   : > { %1503 = vpow2.f32 %v1246_v44 }
 0x8f5   : > { %v1502_v43 = vpop.eup %1501 }
 0x8f6   : > { %574 = vrot.lane.b32.xlu0 %v1502_v43, %s1596_s30 }
 0x8f7   : > { %v1504_v45 = vpop.eup %1503 }
 0x8f8   : > { %v568_v46 = vadd.f32 1.0, %v1504_v45 }
 0x8fa   : > { %1505 = vrcp.f32 %v568_v46  ;;  %v69_v46 = vld [vmem:[#allocation2 + $0xc] sm:$0x3] }
 0x907   : > { %v1506_v47 = vpop.eup %1505 }
 0x908   : > { %v572_v50 = vmul.f32 %v1506_v47, %v480_v30 }
 0x968   : > { %v575_v48 = vpop.permute.xlu0 %574 }
 0x969   : > { %v577_v49 = vmul.f32 %v1506_v47, %v575_v48 }
 0x96b   : > { %579 = vrot.lane.b32.xlu1 %v577_v49, %s1597_s7 }
 0x9dd   : > { %v580_v51 = vpop.permute.xlu1 %579 }
 0x9de   : > { %v582_v52 = vadd.f32 %v580_v51, %v572_v50 }
 0x9e0   : > { %1507 = vtanh.f32 %v582_v52 }
 0x9ed   : > { %v1508_v53 = vpop.eup %1507 }
 0x9ee   : > { %585 = vrot.lane.b32.xlu0 %v1508_v53, %s1596_s30 }
 0x9f2   : > { %97 = vperm.xlu0 %1475, %v67_v54  }
 0xa60   : > { %v586_v55 = vpop.permute.xlu0 %585 }
 0xa61   : > { %v588_v56 = vmul.f32 %v1506_v47, %v586_v55 }
 0xa63   : > { %592 = vrot.lane.b32.xlu1 %v588_v56, %s1597_s7 }
 0xa6d   : > { %v98_v57 = vpop.permute.xlu0 %97 }
 0xa6e   : > { %v145_v58 = vmul.f32 %v1745_v20, %v98_v57 }
 0xa70   : > { %v163_v59 = vadd.f32 %v1747_v21, %v145_v58 }
 0xa72   : > { %175 = vst [vmem:[#allocation3 + $0x8] sm:$0x3] %v163_v59 }
 0xa79   : > { %v590_v61 = vld [vmem:[#allocation3 + $0x8] sm:$0x3] }
 0xad5   : > { %v593_v60 = vpop.permute.xlu1 %592 }
 0xad6   : > { %1369 = vmatmul.mubr.msk.f32.vlgmr.msra.gmra.mxu0 %vm184_vm2, %v593_v60 }
 0xad7   : > { %1383 = vmatpush3.msra.mxu0 %v1684_v11  ;;  %1390 = vmatprep.mubr.msk.f32.mxu0 %vm1594_vm1, %v1593_v9 }
 0xad8   : > { %1384 = vmatprep.subr.mxu0 %v1593_v9 }
 0xad9   : > { %1385 = vmatpush3.msra.mxu0 %v1693_v12 }
 0xada   : > { %1386 = vmatprep.subr.mxu0 %v1593_v9 }
 0xadb   : > { %1387 = vmatpush3.msra.mxu0 %v1709_v18 }
 0xadc   : > { %1388 = vmatprep.subr.mxu0 %v1593_v9 }
 0xadd   : > { %1389 = vmatpush3.msra.mxu0 %v1715_v19 }
 0xb96   : > { %v662_v62 = vpop.f32.mrf.mxu0 }
 0xb97   : > { %v666_v63 = vadd.f32 %v662_v62, %v590_v61 }
 0xb98   : > { %v1370_v0 = vpop.f32.mrf.mxu0 }
 0xb99   : > { %1509 = vtanh.f32 %v666_v63  ;;  %v1248_v2 = vmul.f32 -1.442695, %v666_v63 }
 0xb9b   : > { %1511 = vpow2.f32 %v1248_v2 }
 0xba6   : > { %v1510_v1 = vpop.eup %1509 }
 0xba7   : > { %676 = vrot.lane.b32.xlu1 %v1510_v1, %s1596_s30 }
 0xba8   : > { %v1512_v3 = vpop.eup %1511 }
 0xba9   : > { %v670_v4 = vadd.f32 1.0, %v1512_v3 }
 0xbab   : > { %1513 = vrcp.f32 %v670_v4  ;;  %v70_v4 = vld [vmem:[#allocation2 + $0xe] sm:$0x3] }
 0xbb8   : > { %v1514_v5 = vpop.eup %1513 }
 0xbb9   : > { %v674_v8 = vmul.f32 %v1514_v5, %v582_v52 }
 0xc19   : > { %v677_v6 = vpop.permute.xlu1 %676 }
 0xc1a   : > { %v679_v7 = vmul.f32 %v1514_v5, %v677_v6 }
 0xc1c   : > { %681 = vrot.lane.b32.xlu0 %v679_v7, %s1597_s7 }
 0xc8e   : > { %v682_v10 = vpop.permute.xlu0 %681 }
 0xc8f   : > { %v684_v22 = vadd.f32 %v682_v10, %v674_v8 }
 0xc91   : > { %1515 = vtanh.f32 %v684_v22 }
 0xc9e   : > { %v1516_v23 = vpop.eup %1515 }
 0xc9f   : > { %687 = vrot.lane.b32.xlu1 %v1516_v23, %s1596_s30 }
 0xca3   : > { %102 = vperm.xlu1 %1476, %v68_v24  }
 0xd11   : > { %v688_v25 = vpop.permute.xlu1 %687 }
 0xd12   : > { %v690_v26 = vmul.f32 %v1514_v5, %v688_v25 }
 0xd14   : > { %694 = vrot.lane.b32.xlu0 %v690_v26, %s1597_s7 }
 0xd1e   : > { %v103_v27 = vpop.permute.xlu1 %102 }
 0xd1f   : > { %v146_v28 = vmul.f32 %v1745_v20, %v103_v27 }
 0xd21   : > { %v164_v29 = vadd.f32 %v1747_v21, %v146_v28  ;;  %v71_v28 = vld [vmem:[#allocation2 + $0x10] sm:$0x3] }
 0xd23   : > { %176 = vst [vmem:[#allocation3 + $0xa] sm:$0x3] %v164_v29  ;;  %v73_v29 = vld [vmem:[#allocation2 + $0x14] sm:$0x3] }
 0xd2a   : > { %v692_v31 = vld [vmem:[#allocation3 + $0xa] sm:$0x3] }
 0xd86   : > { %v695_v30 = vpop.permute.xlu0 %694 }
 0xd87   : > { %1380 = vmatmul.mubr.msk.f32.vlgmr.msra.gmra.mxu1 %vm184_vm2, %v695_v30 }
 0xd88   : > { %1394 = vmatpush3.msra.mxu1 %v1684_v11  ;;  %1401 = vmatprep.mubr.msk.f32.mxu1 %vm1594_vm1, %v1593_v9 }
 0xd89   : > { %1395 = vmatprep.subr.mxu1 %v1593_v9 }
 0xd8a   : > { %1396 = vmatpush3.msra.mxu1 %v1693_v12 }
 0xd8b   : > { %1397 = vmatprep.subr.mxu1 %v1593_v9 }
 0xd8c   : > { %1398 = vmatpush3.msra.mxu1 %v1709_v18 }
 0xd8d   : > { %1399 = vmatprep.subr.mxu1 %v1593_v9 }
 0xd8e   : > { %1400 = vmatpush3.msra.mxu1 %v1715_v19 }
 0xe47   : > { %v764_v32 = vpop.f32.mrf.mxu1 }
 0xe48   : > { %v768_v33 = vadd.f32 %v764_v32, %v692_v31 }
 0xe49   : > { %v1381_v34 = vpop.f32.mrf.mxu1 }
 0xe4a   : > { %1517 = vtanh.f32 %v768_v33  ;;  %v1250_v36 = vmul.f32 -1.442695, %v768_v33 }
 0xe4c   : > { %1519 = vpow2.f32 %v1250_v36  ;;  %v72_v36 = vld [vmem:[#allocation2 + $0x12] sm:$0x3] }
 0xe57   : > { %v1518_v35 = vpop.eup %1517 }
 0xe58   : > { %778 = vrot.lane.b32.xlu0 %v1518_v35, %s1596_s30 }
 0xe59   : > { %v1520_v37 = vpop.eup %1519 }
 0xe5a   : > { %v772_v38 = vadd.f32 1.0, %v1520_v37  ;;  %v74_v37 = vld [vmem:[#allocation2 + $0x16] sm:$0x3] }
 0xe5c   : > { %1521 = vrcp.f32 %v772_v38 }
 0xe69   : > { %v1522_v39 = vpop.eup %1521 }
 0xe6a   : > { %v776_v42 = vmul.f32 %v1522_v39, %v684_v22 }
 0xeca   : > { %v779_v40 = vpop.permute.xlu0 %778 }
 0xecb   : > { %v781_v41 = vmul.f32 %v1522_v39, %v779_v40 }
 0xecd   : > { %783 = vrot.lane.b32.xlu1 %v781_v41, %s1597_s7 }
 0xf3f   : > { %v784_v43 = vpop.permute.xlu1 %783 }
 0xf40   : > { %v786_v44 = vadd.f32 %v784_v43, %v776_v42 }
 0xf42   : > { %1523 = vtanh.f32 %v786_v44 }
 0xf4f   : > { %v1524_v45 = vpop.eup %1523 }
 0xf50   : > { %789 = vrot.lane.b32.xlu0 %v1524_v45, %s1596_s30 }
 0xf54   : > { %107 = vperm.xlu0 %1475, %v69_v46  }
 0xfc2   : > { %v790_v47 = vpop.permute.xlu0 %789 }
 0xfc3   : > { %v792_v48 = vmul.f32 %v1522_v39, %v790_v47 }
 0xfc5   : > { %796 = vrot.lane.b32.xlu1 %v792_v48, %s1597_s7 }
 0xfcf   : > { %v108_v49 = vpop.permute.xlu0 %107 }
 0xfd0   : > { %v147_v50 = vmul.f32 %v1745_v20, %v108_v49 }
 0xfd2   : > { %v165_v51 = vadd.f32 %v1747_v21, %v147_v50 }
 0xfd4   : > { %177 = vst [vmem:[#allocation3 + $0xc] sm:$0x3] %v165_v51 }
 0xfdb   : > { %v794_v53 = vld [vmem:[#allocation3 + $0xc] sm:$0x3] }
0x1037   : > { %v797_v52 = vpop.permute.xlu1 %796 }
0x1038   : > { %1391 = vmatmul.mubr.msk.f32.vlgmr.msra.gmra.mxu0 %vm184_vm2, %v797_v52 }
0x10f8   : > { %v866_v54 = vpop.f32.mrf.mxu0 }
0x10f9   : > { %v870_v55 = vadd.f32 %v866_v54, %v794_v53 }
0x10fa   : > { %v1392_v56 = vpop.f32.mrf.mxu0 }
0x10fb   : > { %1525 = vtanh.f32 %v870_v55  ;;  %v1252_v58 = vmul.f32 -1.442695, %v870_v55 }
0x10fd   : > { %1527 = vpow2.f32 %v1252_v58 }
0x1108   : > { %v1526_v57 = vpop.eup %1525 }
0x1109   : > { %880 = vrot.lane.b32.xlu1 %v1526_v57, %s1596_s30 }
0x110a   : > { %v1528_v59 = vpop.eup %1527 }
0x110b   : > { %v874_v60 = vadd.f32 1.0, %v1528_v59 }
0x110d   : > { %1529 = vrcp.f32 %v874_v60 }
0x111a   : > { %v1530_v61 = vpop.eup %1529 }
0x111b   : > { %v878_v0 = vmul.f32 %v1530_v61, %v786_v44 }
0x117b   : > { %v881_v62 = vpop.permute.xlu1 %880 }
0x117c   : > { %v883_v63 = vmul.f32 %v1530_v61, %v881_v62 }
0x117e   : > { %885 = vrot.lane.b32.xlu0 %v883_v63, %s1597_s7 }
0x11f0   : > { %v886_v1 = vpop.permute.xlu0 %885 }
0x11f1   : > { %v888_v2 = vadd.f32 %v886_v1, %v878_v0 }
0x11f3   : > { %1531 = vtanh.f32 %v888_v2 }
0x1200   : > { %v1532_v3 = vpop.eup %1531 }
0x1201   : > { %891 = vrot.lane.b32.xlu1 %v1532_v3, %s1596_s30 }
0x1205   : > { %112 = vperm.xlu1 %1476, %v70_v4  }
0x1273   : > { %v892_v5 = vpop.permute.xlu1 %891 }
0x1274   : > { %v894_v6 = vmul.f32 %v1530_v61, %v892_v5 }
0x1276   : > { %898 = vrot.lane.b32.xlu0 %v894_v6, %s1597_s7 }
0x1280   : > { %v113_v7 = vpop.permute.xlu1 %112 }
0x1281   : > { %v148_v8 = vmul.f32 %v1745_v20, %v113_v7 }
0x1283   : > { %v166_v10 = vadd.f32 %v1747_v21, %v148_v8 }
0x1285   : > { %178 = vst [vmem:[#allocation3 + $0xe] sm:$0x3] %v166_v10 }
0x128c   : > { %v896_v23 = vld [vmem:[#allocation3 + $0xe] sm:$0x3] }
0x12e8   : > { %v899_v22 = vpop.permute.xlu0 %898 }
0x12e9   : > { %1402 = vmatmul.mubr.msk.f32.vlgmr.msra.gmra.mxu1 %vm184_vm2, %v899_v22 }
0x13a9   : > { %v968_v24 = vpop.f32.mrf.mxu1 }
0x13aa   : > { %v972_v25 = vadd.f32 %v968_v24, %v896_v23 }
0x13ab   : > { %v1403_v26 = vpop.f32.mrf.mxu1 }
0x13ac   : > { %1533 = vtanh.f32 %v972_v25  ;;  %v1254_v30 = vmul.f32 -1.442695, %v972_v25 }
0x13ae   : > { %1535 = vpow2.f32 %v1254_v30 }
0x13b9   : > { %v1534_v27 = vpop.eup %1533 }
0x13ba   : > { %982 = vrot.lane.b32.xlu0 %v1534_v27, %s1596_s30 }
0x13bb   : > { %v1536_v31 = vpop.eup %1535 }
0x13bc   : > { %v976_v32 = vadd.f32 1.0, %v1536_v31 }
0x13be   : > { %117 = vperm.xlu0 %1475, %v71_v28   ;;  %1537 = vrcp.f32 %v976_v32 }
0x13c2   : > { %127 = vperm.xlu0 %1475, %v73_v29  }
0x13cb   : > { %v1538_v33 = vpop.eup %1537 }
0x13cc   : > { %v980_v44 = vmul.f32 %v1538_v33, %v888_v2 }
0x142c   : > { %v983_v34 = vpop.permute.xlu0 %982 }
0x142d   : > { %v985_v35 = vmul.f32 %v1538_v33, %v983_v34 }
0x142f   : > { %987 = vrot.lane.b32.xlu1 %v985_v35, %s1597_s7 }
0x1433   : > { %122 = vperm.xlu1 %1476, %v72_v36  }
0x1437   : > { %132 = vperm.xlu1 %1476, %v74_v37  }
0x1439   : > { %v118_v38 = vpop.permute.xlu0 %117 }
0x143a   : > { %v149_v39 = vmul.f32 %v1745_v20, %v118_v38 }
0x143c   : > { %v167_v40 = vadd.f32 %v1747_v21, %v149_v39 }
0x143d   : > { %v128_v41 = vpop.permute.xlu0 %127 }
0x143e   : > { %179 = vst [vmem:[#allocation3 + $0x10] sm:$0x3] %v167_v40  ;;  %v151_v42 = vmul.f32 %v1745_v20, %v128_v41 }
0x1440   : > { %v169_v43 = vadd.f32 %v1747_v21, %v151_v42 }
0x1442   : > { %181 = vst [vmem:[#allocation3 + $0x14] sm:$0x3] %v169_v43 }
0x14a1   : > { %v988_v45 = vpop.permute.xlu1 %987 }
0x14a2   : > { %v990_v46 = vadd.f32 %v988_v45, %v980_v44  }
0x14a4   : > { %1539 = vtanh.f32 %v990_v46 }
0x14ae   : > { %v123_v47 = vpop.permute.xlu1 %122 }
0x14af   : > { %v150_v48 = vmul.f32 %v1745_v20, %v123_v47 }
0x14b1   : > { %v1540_v49 = vpop.eup %1539  ;;  %v168_v50 = vadd.f32 %v1747_v21, %v150_v48 }
0x14b2   : > { %v133_v51 = vpop.permute.xlu1 %132  ;;  %993 = vrot.lane.b32.xlu0 %v1540_v49, %s1596_s30 }
0x14b3   : > { %180 = vst [vmem:[#allocation3 + $0x12] sm:$0x3] %v168_v50  ;;  %v152_v52 = vmul.f32 %v1745_v20, %v133_v51 }
0x14b5   : > { %v170_v53 = vadd.f32 %v1747_v21, %v152_v52 }
0x14b7   : > { %182 = vst [vmem:[#allocation3 + $0x16] sm:$0x3] %v170_v53 }
0x1523   : > { %1225 = sbr.rel (%p1255_p0) target bundleno = 6109 (0x17dd), region = 67 }
0x1524   : > { %v994_v54 = vpop.permute.xlu0 %993 }
0x1525   : > { %v996_v55 = vmul.f32 %v1538_v33, %v994_v54  }
0x1527   : > { %v1589_v56 = vmov %v996_v55  }
0x1528   : > { %v1577_v57 = vmov %v990_v46   ;;  %v1581_v58 = vmov %v996_v55  }
0x1529 LB: >> { %v1598_v20 = vmov 0.0   ;;  %vm1599_vm3 = vmmov 0   ;;  %s1600_s9 = smov 32   ;;  %s1256_s10 = sshll.u32 %s1587_s8, 1  ;;  %s1587_s8 = sphi %s1861_s8, %s1001_s8   ;;  %v1583_v58 = vphi %v1581_v58, %v1582_v58   ;;  %v1579_v57 = vphi %v1577_v57, %v1102_v57  }
0x152a   : >> { %1404 = vmatprep.subr.mxu0 %v1598_v20  ;;  %1412 = vmatprep.mubr.msk.f32.mxu0 %vm1599_vm3, %v1598_v20  ;;  %s1007_s11 = scalar_lea.vmem [#allocation3], %s1256_s10  ;;  %s1601_s12 = smov 64  }
0x152b   : >> { %1010 = vrot.lane.b32.xlu0 %v1583_v58, %s1600_s9  ;;  %1405 = vmatpush3.msra.mxu0 %v1684_v11  ;;  %v1008_v59 = vld [vmem:[%s1007_s11] sm:$0x3]  ;;  %s1001_s8 = sadd.s32 1, %s1587_s8  }
0x152c   : >> { %1406 = vmatprep.subr.mxu0 %v1598_v20  ;;  %p1000_p1 = scmp.ge.s32.totalorder %s1001_s8, %s997_s23 }
0x152d   : >> { %1407 = vmatpush3.msra.mxu0 %v1693_v12 }
0x152e   : >> { %1408 = vmatprep.subr.mxu0 %v1598_v20 }
0x152f   : >> { %1409 = vmatpush3.msra.mxu0 %v1709_v18 }
0x1530   : >> { %1410 = vmatprep.subr.mxu0 %v1598_v20 }
0x1531   : >> { %1411 = vmatpush3.msra.mxu0 %v1715_v19 }
0x159d   : >> { %v1011_v21 = vpop.permute.xlu0 %1010 }
0x159e   : >> { %1413 = vmatmul.mubr.msk.f32.vlgmr.msra.gmra.mxu0 %vm184_vm2, %v1011_v21 }
0x165e   : >> { %v1080_v60 = vpop.f32.mrf.mxu0 }
0x165f   : >> { %v1084_v61 = vadd.f32 %v1080_v60, %v1008_v59 }
0x1660   : >> { %v1414_v62 = vpop.f32.mrf.mxu0 }
0x1661   : >> { %1541 = vtanh.f32 %v1084_v61  ;;  %v1258_v0 = vmul.f32 -1.442695, %v1084_v61 }
0x1663   : >> { %1543 = vpow2.f32 %v1258_v0 }
0x166e   : >> { %v1542_v63 = vpop.eup %1541 }
0x166f   : >> { %1094 = vrot.lane.b32.xlu0 %v1542_v63, %s1601_s12 }
0x1670   : >> { %v1544_v1 = vpop.eup %1543 }
0x1671   : >> { %v1088_v2 = vadd.f32 1.0, %v1544_v1 }
0x1673   : >> { %1545 = vrcp.f32 %v1088_v2 }
0x1680   : >> { %v1546_v3 = vpop.eup %1545 }
0x1681   : >> { %v1092_v6 = vmul.f32 %v1579_v57, %v1546_v3 }
0x16e1   : >> { %v1095_v4 = vpop.permute.xlu0 %1094 }
0x16e2   : >> { %v1097_v5 = vmul.f32 %v1546_v3, %v1095_v4 }
0x16e4   : >> { %1099 = vrot.lane.b32.xlu1 %v1097_v5, %s1600_s9 }
0x1756   : >> { %v1100_v7 = vpop.permute.xlu1 %1099 }
0x1757   : >> { %v1102_v57 = vadd.f32 %v1100_v7, %v1092_v6  }
0x1759   : >> { %1547 = vtanh.f32 %v1102_v57 }
0x1766   : >> { %v1548_v8 = vpop.eup %1547 }
0x1767   : >> { %1105 = vrot.lane.b32.xlu1 %v1548_v8, %s1601_s12 }
0x17d8   : > { %1003 = sbr.rel (!%p1000_p1) target bundleno = 5417 (0x1529), region = 73 }
0x17d9   : >> { %v1106_v10 = vpop.permute.xlu1 %1105 }
0x17da   : >> { %v1108_v22 = vmul.f32 %v1546_v3, %v1106_v10  }
0x17dc   : >> { %v1582_v58 = vmov %v1108_v22   ;;  %v1590_v56 = vmov (%p1000_p1), %v1108_v22  }
0x17dd PF: > { %1116 = vrot.lane.b32.xlu0 %v1591_v56, %s1597_s7  ;;  %1415 = vmatprep.subr.mxu0 %v1593_v9  ;;  %s1263_s0 = sshll.u32 %s1575_s13, 1  ;;  %s45_s13 = sadd.s32 1, %s1575_s13   ;;  %v1591_v56 = vphi %v1589_v56, %v1590_v56  }
0x17de   : > { %1416 = vmatpush3.msra.mxu0 %v1704_v16  ;;  %1423 = vmatprep.mubr.msk.f32.mxu0 %vm1594_vm1, %v1593_v9  ;;  %s1201_s16 = scalar_lea.vmem %s1905_s6, %s1263_s0  ;;  %s1217_s17 = scalar_lea.vmem [#allocation2], %s1263_s0 }
0x17df   : > { %1417 = vmatprep.subr.mxu0 %v1593_v9  ;;  %p42_p2 = scmp.ge.s32.totalorder %s45_s13, 4  }
0x17e0   : > { %1418 = vmatpush3.msra.mxu0 %v1699_v15 }
0x17e1   : > { %1419 = vmatprep.subr.mxu0 %v1593_v9 }
0x17e2   : > { %1420 = vmatpush3.msra.mxu0 %v1697_v14 }
0x17e3   : > { %1421 = vmatprep.subr.mxu0 %v1593_v9 }
0x17e4   : > { %1422 = vmatpush3.msra.mxu0 %v1695_v13 }
0x184f   : > { %v1117_v11 = vpop.permute.xlu0 %1116 }
0x1850   : > { %1424 = vmatmul.mubr.msk.f32.vlgmr.msra.gmra.mxu0 %vm184_vm2, %v1117_v11 }
0x1910   : > { %v1186_v12 = vpop.f32.mrf.mxu0 }
0x1911   : > { %v1187_v16 = vadd.f32 %v1706_v17, %v1186_v12 }
0x1912   : > { %v1425_v18 = vpop.f32.mrf.mxu0 }
0x1913   : > { %v1261_v19 = vadd.f32 -0.5, %v1187_v16 }
0x1915   : > { %v1262_v23 = vmul.f32 -1.442695, %v1261_v19 }
0x1917   : > { %1549 = vpow2.f32 %v1262_v23 }
0x1924   : > { %v1550_v15 = vpop.eup %1549 }
0x1925   : > { %v1194_v24 = vadd.f32 1.0, %v1550_v15 }
0x1927   : > { %1551 = vrcp.f32 %v1194_v24 }
0x1931   :  { %44 = sbr.rel (!%p42_p2) target bundleno = 7 (0x7), region = 84 }
0x1934   : > { %v1552_v9 = vpop.eup %1551 }
0x1935   : > { %1264 = vst.msk [vmem:[%s1217_s17 + $0x10] sm:$0x3] %vm31_vm0, %v1552_v9  ;;  %1202 = vst.msk [vmem:[%s1201_s16] sm:$0x3] %vm31_vm0, %v1552_v9 }

</bundles_post_ra>
